<compile_context>
chip_gen: v7x
topology: tpu7x:2x2x1
jax: 0.10.0
libtpu: 0.0.40
codegen_flags: <defaults>
</compile_context>

<pallas_src>
import jax
import jax.numpy as jnp
import numpy as np
from jax.experimental import pallas as pl
from jax.experimental.pallas import tpu as pltpu

EPS = 1e-5


def ffn_kernel(x_ref, w1_ref, b1_ref, w2_ref, b2_ref, g_ref, beta_ref, out_ref):
    # x_ref: [TM, D] tile of flattened tokens, features on the lane dim.
    x = x_ref[...].astype(jnp.float32)

    # ---- fc1 + ReLU ----
    h = jnp.dot(x, w1_ref[...], preferred_element_type=jnp.float32) + b1_ref[...]
    h = jnp.maximum(h, 0.0)

    # ---- residual add (requires out_features == in_features, as in PyTorch) ----
    h = h + x

    # ---- fc2 + ReLU ----
    h2 = jnp.dot(h, w2_ref[...], preferred_element_type=jnp.float32) + b2_ref[...]
    h2 = jnp.maximum(h2, 0.0)

    # ---- LayerNorm over the feature dim (biased variance, eps=1e-5) ----
    mu = jnp.mean(h2, axis=-1, keepdims=True)
    diff = h2 - mu
    var = jnp.mean(diff * diff, axis=-1, keepdims=True)
    normed = diff * jax.lax.rsqrt(var + EPS)
    out_ref[...] = (normed * g_ref[...] + beta_ref[...]).astype(out_ref.dtype)


def _round_up(a, b):
    return -(-a // b) * b


def ffn_forward(x, params, *, block_rows=256):
    """x: [..., in_features].  params = (w1, b1, w2, b2, gamma, beta) with
    PyTorch nn.Linear layouts: w1 [out, in], w2 [in, out]."""
    w1, b1, w2, b2, gamma, beta = params
    D = x.shape[-1]            # in_features
    H = w1.shape[0]            # out_features
    orig_shape = x.shape

    # Flatten all leading dims into one row axis (FFN is purely row-wise).
    x2 = x.reshape(-1, D)
    M = x2.shape[0]

    # Row tile: multiple of 8 sublanes, capped by the (rounded-up) row count.
    tm = min(_round_up(max(block_rows, 8), 8), _round_up(M, 8))
    num_tiles = -(-M // tm)
    Mp = num_tiles * tm
    if Mp != M:
        x2 = jnp.pad(x2, ((0, Mp - M), (0, 0)))

    # Transpose PyTorch weights once (outside the kernel) so both matmuls are
    # row-major (rows, D) @ (D, H) with the output feature on the lane dim.
    w1_t = jnp.asarray(w1, jnp.float32).T          # [D, H]
    w2_t = jnp.asarray(w2, jnp.float32).T          # [H, D]
    b1r = jnp.asarray(b1, jnp.float32).reshape(1, H)
    b2r = jnp.asarray(b2, jnp.float32).reshape(1, D)
    gr = jnp.asarray(gamma, jnp.float32).reshape(1, D)
    br = jnp.asarray(beta, jnp.float32).reshape(1, D)

    itemsize = 4
    cost = pl.CostEstimate(
        flops=4 * Mp * D * H,                      # two matmuls
        transcendentals=Mp,                        # one rsqrt per row
        bytes_accessed=(2 * Mp * D + 2 * D * H + H + 3 * D) * itemsize,
    )

    const2 = lambda i: (0, 0)

    out = pl.pallas_call(
        ffn_kernel,
        out_shape=jax.ShapeDtypeStruct((Mp, D), x.dtype),
        grid=(num_tiles,),
        in_specs=[
            pl.BlockSpec((tm, D), lambda i: (i, 0)),   # x tile
            pl.BlockSpec((D, H), const2),              # w1^T (VMEM-resident)
            pl.BlockSpec((1, H), const2),              # b1
            pl.BlockSpec((H, D), const2),              # w2^T (VMEM-resident)
            pl.BlockSpec((1, D), const2),              # b2
            pl.BlockSpec((1, D), const2),              # LayerNorm gamma
            pl.BlockSpec((1, D), const2),              # LayerNorm beta
        ],
        out_specs=pl.BlockSpec((tm, D), lambda i: (i, 0)),
        compiler_params=pltpu.CompilerParams(
            dimension_semantics=("parallel",)),        # v7x: 2 TCs split row tiles
        cost_estimate=cost,
    )(x2, w1_t, b1r, w2_t, b2r, gr, br)

    if Mp != M:
        out = out[:M]
    return out.reshape(orig_shape[:-1] + (D,))


# ---------------- pure-JAX reference (PyTorch semantics) ----------------
def ffn_ref(x, params):
    w1, b1, w2, b2, gamma, beta = params
    identity = x
    h = jnp.maximum(x @ w1.T + b1, 0.0)
    h = h + identity
    h2 = jnp.maximum(h @ w2.T + b2, 0.0)
    mu = jnp.mean(h2, axis=-1, keepdims=True)
    var = jnp.mean((h2 - mu) ** 2, axis=-1, keepdims=True)
    return (h2 - mu) / jnp.sqrt(var + EPS) * gamma + beta


if __name__ == "__main__":
    key = jax.random.PRNGKey(0)
    B, N = 2, 8                      # batch, tokens
    in_features = 128                # lane-dense (multiple of 128)
    out_features = 128               # residual requires == in_features

    ks = jax.random.split(key, 5)
    x = jax.random.normal(ks[0], (B, N, in_features), jnp.float32)
    # PyTorch nn.Linear layouts: weight [out, in]; xavier-ish scale, zero bias.
    w1 = (1.0 / np.sqrt(in_features)) * jax.random.normal(
        ks[1], (out_features, in_features), jnp.float32)
    b1 = jnp.zeros((out_features,), jnp.float32)
    w2 = (1.0 / np.sqrt(out_features)) * jax.random.normal(
        ks[2], (in_features, out_features), jnp.float32)
    b2 = jnp.zeros((in_features,), jnp.float32)
    gamma = 1.0 + 0.1 * jax.random.normal(ks[3], (in_features,), jnp.float32)
    beta = 0.1 * jax.random.normal(ks[4], (in_features,), jnp.float32)
    params = (w1, b1, w2, b2, gamma, beta)

    # block_rows=8 -> 2 row tiles -> exercises the pipelined grid and maps the
    # "parallel" axis onto v7x's 2 TensorCores; raise on v5e/v6e for big shapes.
    out = ffn_forward(x, params, block_rows=8)
    jax.block_until_ready(out)

    ref = ffn_ref(x, params)
    assert out.shape == (B, N, in_features)
    np.testing.assert_allclose(np.asarray(out), np.asarray(ref), rtol=1e-4, atol=1e-4)
    print("KERNEL_OK")
</pallas_src>

<mosaic_0001>
module attributes {stable_mosaic.version = 11 : i64} {
  func.func @ffn_kernel(%arg0: i32, %arg1: memref<8x128xf32, #tpu.memory_space<vmem>>, %arg2: memref<128x128xf32, #tpu.memory_space<vmem>>, %arg3: memref<1x128xf32, #tpu.memory_space<vmem>>, %arg4: memref<128x128xf32, #tpu.memory_space<vmem>>, %arg5: memref<1x128xf32, #tpu.memory_space<vmem>>, %arg6: memref<1x128xf32, #tpu.memory_space<vmem>>, %arg7: memref<1x128xf32, #tpu.memory_space<vmem>>, %arg8: memref<8x128xf32, #tpu.memory_space<vmem>>) attributes {dimension_semantics = [#tpu.dimension_semantics<parallel>], iteration_bounds = array<i64: 2>, scalar_prefetch = 0 : i64, scratch_operands = 0 : i64, tpu.core_type = #tpu.core_type<tc>, window_params = [{transform_indices = @transform_0, window_bounds = array<i64: 8, 128>}, {pipeline_mode = #tpu.pipeline_mode<synchronous>, transform_indices = @transform_1, window_bounds = array<i64: 128, 128>}, {pipeline_mode = #tpu.pipeline_mode<synchronous>, transform_indices = @transform_2, window_bounds = array<i64: 1, 128>}, {pipeline_mode = #tpu.pipeline_mode<synchronous>, transform_indices = @transform_3, window_bounds = array<i64: 128, 128>}, {pipeline_mode = #tpu.pipeline_mode<synchronous>, transform_indices = @transform_4, window_bounds = array<i64: 1, 128>}, {pipeline_mode = #tpu.pipeline_mode<synchronous>, transform_indices = @transform_5, window_bounds = array<i64: 1, 128>}, {pipeline_mode = #tpu.pipeline_mode<synchronous>, transform_indices = @transform_6, window_bounds = array<i64: 1, 128>}, {transform_indices = @transform_7, window_bounds = array<i64: 8, 128>}]} {
    %c0 = arith.constant 0 : index
    %c0_0 = arith.constant 0 : index
    %0 = vector.load %arg1[%c0, %c0_0] : memref<8x128xf32, #tpu.memory_space<vmem>>, vector<8x128xf32>
    %c0_1 = arith.constant 0 : index
    %c0_2 = arith.constant 0 : index
    %1 = vector.load %arg2[%c0_1, %c0_2] : memref<128x128xf32, #tpu.memory_space<vmem>>, vector<128x128xf32>
    %cst = arith.constant dense<0.000000e+00> : vector<8x128xf32>
    %2 = tpu.matmul %0, %1, %cst {dimension_numbers = #tpu.dot_dimension_numbers<[1], [0], [0], [1], [0, 0, 1, 1], [], []>} : vector<8x128xf32>, vector<128x128xf32>, vector<8x128xf32> -> vector<8x128xf32>
    %c0_3 = arith.constant 0 : index
    %c0_4 = arith.constant 0 : index
    %3 = vector.load %arg3[%c0_3, %c0_4] : memref<1x128xf32, #tpu.memory_space<vmem>>, vector<1x128xf32>
    %4 = vector.broadcast %3 : vector<1x128xf32> to vector<8x128xf32>
    %5 = arith.addf %2, %4 : vector<8x128xf32>
    %cst_5 = arith.constant 0.000000e+00 : f32
    %6 = vector.broadcast %cst_5 : f32 to vector<8x128xf32>
    %7 = arith.maximumf %5, %6 : vector<8x128xf32>
    %8 = arith.addf %7, %0 : vector<8x128xf32>
    %c0_6 = arith.constant 0 : index
    %c0_7 = arith.constant 0 : index
    %9 = vector.load %arg4[%c0_6, %c0_7] : memref<128x128xf32, #tpu.memory_space<vmem>>, vector<128x128xf32>
    %cst_8 = arith.constant dense<0.000000e+00> : vector<8x128xf32>
    %10 = tpu.matmul %8, %9, %cst_8 {dimension_numbers = #tpu.dot_dimension_numbers<[1], [0], [0], [1], [0, 0, 1, 1], [], []>} : vector<8x128xf32>, vector<128x128xf32>, vector<8x128xf32> -> vector<8x128xf32>
    %c0_9 = arith.constant 0 : index
    %c0_10 = arith.constant 0 : index
    %11 = vector.load %arg5[%c0_9, %c0_10] : memref<1x128xf32, #tpu.memory_space<vmem>>, vector<1x128xf32>
    %12 = vector.broadcast %11 : vector<1x128xf32> to vector<8x128xf32>
    %13 = arith.addf %10, %12 : vector<8x128xf32>
    %cst_11 = arith.constant 0.000000e+00 : f32
    %14 = vector.broadcast %cst_11 : f32 to vector<8x128xf32>
    %15 = arith.maximumf %13, %14 : vector<8x128xf32>
    %cst_12 = arith.constant dense<0.000000e+00> : vector<8xf32>
    %16 = vector.multi_reduction <add>, %15, %cst_12 [1] : vector<8x128xf32> to vector<8xf32>
    %17 = vector.shape_cast %16 : vector<8xf32> to vector<8x1xf32>
    %cst_13 = arith.constant 1.280000e+02 : f32
    %18 = vector.broadcast %cst_13 : f32 to vector<8x1xf32>
    %19 = arith.divf %17, %18 : vector<8x1xf32>
    %20 = vector.broadcast %19 : vector<8x1xf32> to vector<8x128xf32>
    %21 = arith.subf %15, %20 : vector<8x128xf32>
    %22 = arith.mulf %21, %21 : vector<8x128xf32>
    %cst_14 = arith.constant dense<0.000000e+00> : vector<8xf32>
    %23 = vector.multi_reduction <add>, %22, %cst_14 [1] : vector<8x128xf32> to vector<8xf32>
    %24 = vector.shape_cast %23 : vector<8xf32> to vector<8x1xf32>
    %cst_15 = arith.constant 1.280000e+02 : f32
    %25 = vector.broadcast %cst_15 : f32 to vector<8x1xf32>
    %26 = arith.divf %24, %25 : vector<8x1xf32>
    %cst_16 = arith.constant 9.99999974E-6 : f32
    %27 = vector.broadcast %cst_16 : f32 to vector<8x1xf32>
    %28 = arith.addf %26, %27 : vector<8x1xf32>
    %29 = math.rsqrt %28 : vector<8x1xf32>
    %30 = vector.broadcast %29 : vector<8x1xf32> to vector<8x128xf32>
    %31 = arith.mulf %21, %30 : vector<8x128xf32>
    %c0_17 = arith.constant 0 : index
    %c0_18 = arith.constant 0 : index
    %32 = vector.load %arg6[%c0_17, %c0_18] : memref<1x128xf32, #tpu.memory_space<vmem>>, vector<1x128xf32>
    %33 = vector.broadcast %32 : vector<1x128xf32> to vector<8x128xf32>
    %34 = arith.mulf %31, %33 : vector<8x128xf32>
    %c0_19 = arith.constant 0 : index
    %c0_20 = arith.constant 0 : index
    %35 = vector.load %arg7[%c0_19, %c0_20] : memref<1x128xf32, #tpu.memory_space<vmem>>, vector<1x128xf32>
    %36 = vector.broadcast %35 : vector<1x128xf32> to vector<8x128xf32>
    %37 = arith.addf %34, %36 : vector<8x128xf32>
    %c0_21 = arith.constant 0 : index
    %c0_22 = arith.constant 0 : index
    %38 = vector.load %arg8[%c0_21, %c0_22] : memref<8x128xf32, #tpu.memory_space<vmem>>, vector<8x128xf32>
    tpu.vector_store %arg8[%c0_21, %c0_22], %37 {strides = array<i32>} : memref<8x128xf32, #tpu.memory_space<vmem>>, vector<8x128xf32>,
    return
  }
  func.func @transform_0(%arg0: i32) -> (i32, i32) {
    %c0_i32 = arith.constant 0 : i32
    %c0_i32_0 = arith.constant 0 : i32
    return %arg0, %c0_i32 : i32, i32
  }
  func.func @transform_1(%arg0: i32) -> (i32, i32) {
    %c0_i32 = arith.constant 0 : i32
    %c0_i32_0 = arith.constant 0 : i32
    %c0_i32_1 = arith.constant 0 : i32
    return %c0_i32, %c0_i32_0 : i32, i32
  }
  func.func @transform_2(%arg0: i32) -> (i32, i32) {
    %c0_i32 = arith.constant 0 : i32
    %c0_i32_0 = arith.constant 0 : i32
    %c0_i32_1 = arith.constant 0 : i32
    return %c0_i32, %c0_i32_0 : i32, i32
  }
  func.func @transform_3(%arg0: i32) -> (i32, i32) {
    %c0_i32 = arith.constant 0 : i32
    %c0_i32_0 = arith.constant 0 : i32
    %c0_i32_1 = arith.constant 0 : i32
    return %c0_i32, %c0_i32_0 : i32, i32
  }
  func.func @transform_4(%arg0: i32) -> (i32, i32) {
    %c0_i32 = arith.constant 0 : i32
    %c0_i32_0 = arith.constant 0 : i32
    %c0_i32_1 = arith.constant 0 : i32
    return %c0_i32, %c0_i32_0 : i32, i32
  }
  func.func @transform_5(%arg0: i32) -> (i32, i32) {
    %c0_i32 = arith.constant 0 : i32
    %c0_i32_0 = arith.constant 0 : i32
    %c0_i32_1 = arith.constant 0 : i32
    return %c0_i32, %c0_i32_0 : i32, i32
  }
  func.func @transform_6(%arg0: i32) -> (i32, i32) {
    %c0_i32 = arith.constant 0 : i32
    %c0_i32_0 = arith.constant 0 : i32
    %c0_i32_1 = arith.constant 0 : i32
    return %c0_i32, %c0_i32_0 : i32, i32
  }
  func.func @transform_7(%arg0: i32) -> (i32, i32) {
    %c0_i32 = arith.constant 0 : i32
    %c0_i32_0 = arith.constant 0 : i32
    return %arg0, %c0_i32 : i32, i32
  }
}

</mosaic_0001>

<bundles_post_ra>
// kernel: tpu_custom_call.1
= control target key start
LH: loop header
LB: loop body
LE: loop exit
PB: predicated region body
PF: predicated region fallthrough
CT: control target
= control target key end

     0   :  { %12 = vsyncpa [#allocation3], 0  ;;  %s1362_s0 = inlined_call_operand.hbm [shape: f32[16,128], index: 0, kind: input, shape index: {}]   ;;  %s1363_s1 = inlined_call_operand.hbm [shape: f32[128,128], index: 1, kind: input, shape index: {}]   ;;  %s1364_s2 = inlined_call_operand.vmem [shape: f32[1,128], index: 2, kind: input, shape index: {}]   ;;  %s1365_s3 = inlined_call_operand.hbm [shape: f32[128,128], index: 3, kind: input, shape index: {}]   ;;  %s1366_s4 = inlined_call_operand.vmem [shape: f32[1,128], index: 4, kind: input, shape index: {}]   ;;  %s1367_s5 = inlined_call_operand.vmem [shape: f32[1,128], index: 5, kind: input, shape index: {}]   ;;  %s1368_s6 = inlined_call_operand.vmem [shape: f32[1,128], index: 6, kind: input, shape index: {}]   ;;  %s1369_s7 = inlined_call_operand.hbm [shape: f32[16,128], index: 7, kind: output, shape index: {}]  }
   0x1   :  { %14 = vsyncpa [#allocation3 + $0x1], 0 }
   0x2   :  { %15 = vsyncpa [#allocation6], 0 }
   0x3   :  { %16 = vsyncpa [#allocation4], 0 }
   0x4   :  { %18 = vsyncpa [#allocation4 + $0x1], 0  ;;  %s1098_s24 = smov 0   ;;  %s1100_s25 = smov 0  }
   0x5   :  { %s1102_s26 = smov 0   ;;  %s1104_s27 = smov 0  }
   0x6 LB: > { %s1119_s28 = sadd.s32 4294967295, %s1047_s27   ;;  %s645_s29 = sadd.s32 4294967294, %s1047_s27   ;;  %s1047_s27 = sphi %s1104_s27, %s1389_s27   ;;  %s1043_s26 = sphi %s1102_s26, %s1388_s26   ;;  %s1039_s25 = sphi %s1100_s25, %s1387_s25   ;;  %s1035_s24 = sphi %s1098_s24, %s1386_s24  }
   0x7   : > { %p44_p0 = scmp.ne.s32.totalorder %s1039_s25, %s1035_s24  ;;  %p1370_p1 = scmp.eq.s32.totalorder %s1119_s28, 0 }
   0x8   : > { %p200_p3 = scmp.eq.s32.totalorder %s645_s29, 1  ;;  %p646_p5 = scmp.ge.s32.totalorder %s1047_s27, 1 }
   0x9   : > { %p1128_p4 = por %p1370_p1, %p44_p0  ;;  %p207_p7 = scmp.lt.s32.totalorder %s1047_s27, 3 }
   0xa   : > { %p1133_p6 = por %p200_p3, %p44_p0  ;;  %s1049_s10 = smov [#allocation5]  }
   0xb   : > { %s1373_s30 = scalar_select %p1128_p4, 1, 0 }
   0xc   : > { %s1374_s8 = scalar_select %p1133_p6, 1, 0 }
   0xd   : > { %p1138_p8 = pnand %p646_p5, %p207_p7  ;;  %s219_s11 = sshll.u32 %s1049_s10, 4  ;;  %s1142_s11 = int_to_ptr.vmem [resolvable:$true] %s219_s11 }
   0xe   : > { %s1050_s13 = smov [#allocation7]   ;;  %s891_s17 = scalar_lea.hbm %s1363_s1, 2048 }
   0xf   : > { %p829_p9 = pneg %p1138_p8  ;;  %s235_s14 = sshll.u32 %s1050_s13, 4  ;;  %s1153_s14 = int_to_ptr.vmem [resolvable:$true] %s235_s14 }
  0x10   : > { %p892_p12 = scmp.ne.s32.totalorder %s1363_s1, %s891_s17  ;;  %p898_p5 = scmp.lt.u32.totalorder %s891_s17, %s1363_s1 }
  0x11   : > { %p1149_p11 = pnand %p829_p9, %p1370_p1 }
  0x13   : > { %p893_p13 = pneg %p1149_p11 }
  0x15   : > { %p894_p0 = pnand %p893_p13, %p892_p12 }
  0x17   : > { %p895_p3 = pneg %p894_p0 }
  0x19   : > { %p900_p7 = pnand %p898_p5, %p895_p3 }
  0x1b   : > { %903 = shalt.err (!%p900_p7)
}
  0x1c   : > { %s904_s22 = scalar_lea.vmem %s1142_s11, 2048  ;;  %p912_p2 = scmp.lt.s32.totalorder %s1142_s11, %s1142_s11 }
  0x1d   : > { %p905_p9 = scmp.ne.s32.totalorder %s1142_s11, %s904_s22  ;;  %p913_p12 = scmp.lt.s32.totalorder %s904_s22, %s904_s22 }
  0x1f   : > { %p907_p10 = pnand %p905_p9, %p893_p13  ;;  %p914_p0 = por %p913_p12, %p912_p2 }
  0x21   : > { %p908_p1 = pneg %p907_p10 }
  0x23   : > { %p915_p6 = pnand %p914_p0, %p908_p1 }
  0x25   : > { %918 = shalt.err (!%p915_p6)
}
  0x26   : > { %s1051_s23 = smov 128   ;;  %s1052_s29 = smov 8  }
  0x27   : > { %832 = dma.hbm_to_vmem [thread:$0]  (!%p1149_p11), %s1363_s1, 2048, %s1142_s11, [#allocation6], %s1051_s23, %s1051_s23, %s1052_s29  }
  0x28   : > { %s919_s17 = scalar_lea.hbm %s1365_s3, 2048 }
  0x29   : > { %p920_p2 = scmp.ne.s32.totalorder %s1365_s3, %s919_s17  ;;  %p926_p10 = scmp.lt.u32.totalorder %s919_s17, %s1365_s3 }
  0x2b   : > { %p922_p1 = pnand %p920_p2, %p893_p13 }
  0x2d   : > { %p923_p6 = pneg %p922_p1 }
  0x2f   : > { %p928_p3 = pnand %p926_p10, %p923_p6 }
  0x31   : > { %931 = shalt.err (!%p928_p3)
}
  0x32   : > { %s932_s11 = scalar_lea.vmem %s1153_s14, 2048  ;;  %p940_p12 = scmp.lt.s32.totalorder %s1153_s14, %s1153_s14 }
  0x33   : > { %p933_p5 = scmp.ne.s32.totalorder %s1153_s14, %s932_s11  ;;  %p941_p0 = scmp.lt.s32.totalorder %s932_s11, %s932_s11 }
  0x35   : > { %p935_p7 = pnand %p933_p5, %p893_p13  ;;  %p942_p2 = por %p941_p0, %p940_p12 }
  0x37   : > { %p936_p9 = pneg %p935_p7 }
  0x39   : > { %p943_p1 = pnand %p942_p2, %p936_p9 }
  0x3b   : > { %946 = shalt.err (!%p943_p1)
}
  0x3c   : > { %835 = dma.hbm_to_vmem [thread:$0]  (!%p1149_p11), %s1365_s3, 2048, %s1153_s14, [#allocation6], %s1051_s23, %s1051_s23, %s1052_s29  }
  0x3d   : > { %s1208_s13 = sadd.s32 1, %s1047_s27   ;;  %s31_s12 = sadd.s32 1, %s1043_s26 }
  0x3e   : > { %s28_s15 = ssub.s32 %s1047_s27, %s1208_s13  ;;  %p38_p13 = scmp.ne.s32.totalorder %s1043_s26, %s1039_s25 }
  0x3f   : > { %p29_p6 = scmp.eq.s32.totalorder %s28_s15, 0  ;;  %p39_p10 = scmp.eq.s32.totalorder %s1047_s27, 0 }
  0x40   : > { %p1377_p3 = scmp.eq.s32.totalorder %s1119_s28, 1  ;;  %p846_p7 = scmp.lt.s32.totalorder %s1047_s27, 2 }
  0x41   : > { %s1224_s17 = scalar_select %p29_p6, %s1043_s26, %s31_s12  }
  0x42   : > { %p1218_p5 = por %p1377_p3, %p38_p13  ;;  %p40_p9 = por %p39_p10, %p38_p13 }
  0x43   : > { %s258_s18 = sand.u32 1, %s1043_s26   ;;  %s651_s14 = sshll.u32 %s1047_s27, 7 }
  0x44   : > { %s1378_s16 = scalar_select %p1218_p5, 1, 0 }
  0x45   : > { %s650_s19 = sshll.u32 %s258_s18, 3  ;;  %s1231_s20 = scalar_lea.hbm %s1362_s0, %s651_s14 }
  0x46   : > { %s262_s21 = scalar_lea.vmem [#allocation2], %s650_s19  ;;  %p1235_p11 = pnand %p846_p7, %p40_p9 }
  0x47   : > { %s269_s11 = sshll.u32 %s262_s21, 4  ;;  %s259_s10 = scalar_lea.sflag [#allocation3], %s258_s18  ;;  %s1233_s11 = int_to_ptr.vmem [resolvable:$true] %s269_s11 }
  0x48   : > { %s947_s12 = scalar_lea.hbm %s1231_s20, 128  ;;  %p949_p0 = pneg %p1235_p11 }
  0x49   : > { %p948_p12 = scmp.ne.s32.totalorder %s1231_s20, %s947_s12  ;;  %s952_s14 = scalar_lea.hbm %s1362_s0, 256 }
  0x4a   : > { %p953_p13 = scmp.lt.u32.totalorder %s1231_s20, %s1362_s0  ;;  %p954_p6 = scmp.lt.u32.totalorder %s952_s14, %s947_s12 }
  0x4b   : > { %p950_p2 = pnand %p949_p0, %p948_p12  ;;  %p956_p3 = scmp.lt.u32.totalorder %s947_s12, %s1231_s20 }
  0x4c   : > { %p955_p10 = por %p954_p6, %p953_p13 }
  0x4d   : > { %p951_p1 = pneg %p950_p2 }
  0x4e   : > { %p957_p7 = por %p956_p3, %p955_p10 }
  0x50   : > { %p958_p9 = pnand %p957_p7, %p951_p1 }
  0x52   : > { %961 = shalt.err (!%p958_p9)
}
  0x53   : > { %s962_s18 = scalar_lea.vmem %s1233_s11, 128  ;;  %s1053_s21 = smov [#allocation2]  }
  0x54   : > { %p963_p12 = scmp.ne.s32.totalorder %s1233_s11, %s962_s18  ;;  %s967_s15 = sshll.u32 %s1053_s21, 4  ;;  %s968_s15 = int_to_ptr.vmem [resolvable:$false] %s967_s15 }
  0x55   : > { %s969_s19 = scalar_lea.vmem %s968_s15, 256  ;;  %p970_p4 = scmp.lt.s32.totalorder %s1233_s11, %s968_s15 }
  0x56   : > { %p965_p2 = pnand %p963_p12, %p949_p0  ;;  %p971_p13 = scmp.lt.s32.totalorder %s969_s19, %s962_s18 }
  0x58   : > { %p966_p5 = pneg %p965_p2  ;;  %p972_p6 = por %p971_p13, %p970_p4 }
  0x5a   : > { %p973_p10 = pnand %p972_p6, %p966_p5 }
  0x5c   : > { %976 = shalt.err (!%p973_p10)
}
  0x5d   : > { %839 = dma.hbm_to_vmem [thread:$0]  (!%p1235_p11), %s1231_s20, 128, %s1233_s11, %s259_s10  }
  0x5e   : > { %278 = sbr.rel (%p1138_p8) target bundleno = 898 (0x382), region = 48  ;;  %s1267_s12 = sand.u32 (!%p1138_p8), 1, %s1039_s25  }
  0x5f   : > { %s653_s14 = sshll.u32 (!%p1138_p8), %s1267_s12, 3  ;;  %s281_s23 = scalar_lea.sflag (!%p1138_p8), [#allocation3], %s1267_s12 }
  0x60   : > { %s1273_s29 = scalar_lea.vmem (!%p1138_p8), [#allocation2], %s653_s14  ;;  %p1380_p4 = scmp.ne.s32.totalorder (!%p1138_p8), %s1373_s30, 0 }
  0x65   : > { %1022 = dma.done.wait (%p1380_p4), %s281_s23, 128  }
  0x66   : > { %1024 = vsyncadd (%p1380_p4), %s281_s23, 4294967168  ;;  %p1381_p5 = scmp.eq.s32.totalorder %s1119_s28, 0 }
  0x68   : > { %1026 = dma.done.wait (%p1381_p5), [#allocation6], 4096   ;;  %p1382_p8 = pmov %p1381_p5 }
  0x69   : > { %v1054_v0 = vmov 0.0|0.0   ;;  %vm1055_vm0 = vmmov 0   ;;  %v1056_v1 = vmov 0.0   ;;  %v324_v2 = vld [vmem:[#allocation5] sm:$0xff]  ;;  %v325_v3 = vld [vmem:[#allocation5 + $0x8] sm:$0xff]  ;;  %v326_v4 = vld [vmem:[#allocation5 + $0x10] sm:$0xff] }
  0x6a   : > { %1028 = vsyncadd (%p1382_p8), [#allocation6], 4294963200  ;;  %769 = vmatprep.subr.bf16.mxu0 %v1054_v0  ;;  %731 = vmatprep.mubr.msk.f32.mxu0 %vm1055_vm0, %v1056_v1  ;;  %v770_v5 = vpack.c.bf16 %v325_v3, %v324_v2  ;;  %v327_v6 = vld [vmem:[#allocation5 + $0x18] sm:$0xff]  ;;  %v328_v8 = vld [vmem:[#allocation5 + $0x20] sm:$0xff]  ;;  %s662_s15 = sshll.u32 %s1119_s28, 7  ;;  %s322_s19 = scalar_lea.vmem [#allocation8], %s653_s14 }
  0x6b   : > { %793 = vmatprep.subr.bf16.mxu1 %v1054_v0  ;;  %766 = vmatprep.mubr.msk.f32.mxu1 %vm1055_vm0, %v1056_v1  ;;  %v773_v7 = vpack.c.bf16 %v327_v6, %v326_v4  ;;  %v329_v9 = vld [vmem:[#allocation5 + $0x28] sm:$0xff]  ;;  %v419_v10 = vld [vmem:[#allocation7] sm:$0xff]  ;;  %v421_v12 = vld [vmem:[#allocation7 + $0x10] sm:$0xff]  ;;  %s556_s23 = sshll.u32 %s322_s19, 4  ;;  %s1318_s9 = scalar_lea.hbm %s1369_s7, %s662_s15  ;;  %s1320_s23 = int_to_ptr.vmem [resolvable:$true] %s556_s23 }
  0x6c   : > { %771 = vmatpush3.bf16.msra.mxu0 %v770_v5  ;;  %v420_v11 = vld [vmem:[#allocation7 + $0x8] sm:$0xff]  ;;  %v422_v13 = vld [vmem:[#allocation7 + $0x18] sm:$0xff]  ;;  %v776_v14 = vpack.c.bf16 %v329_v9, %v328_v8  ;;  %v330_v16 = vld [vmem:[#allocation5 + $0x30] sm:$0xff]  ;;  %s543_s20 = scalar_lea.sflag [#allocation4], %s1267_s12  ;;  %s977_s11 = scalar_lea.vmem %s1320_s23, 128 }
  0x6d   : > { %772 = vmatprep.subr.bf16.mxu0 %v1054_v0  ;;  %v794_v15 = vpack.c.bf16 %v420_v11, %v419_v10  ;;  %v331_v17 = vld [vmem:[#allocation5 + $0x38] sm:$0xff]  ;;  %v797_v18 = vpack.c.bf16 %v422_v13, %v421_v12  ;;  %v423_v19 = vld [vmem:[#allocation7 + $0x20] sm:$0xff]  ;;  %v424_v20 = vld [vmem:[#allocation7 + $0x28] sm:$0xff]  ;;  %p978_p11 = scmp.ne.s32.totalorder %s1320_s23, %s977_s11  ;;  %p1383_p0 = scmp.ne.s32.totalorder %s1378_s16, 0 }
  0x6e   : > { %v779_v21 = vpack.c.bf16 %v331_v17, %v330_v16  ;;  %v332_v22 = vld [vmem:[#allocation5 + $0x40] sm:$0xff]  ;;  %v333_v23 = vld [vmem:[#allocation5 + $0x48] sm:$0xff]  ;;  %v800_v24 = vpack.c.bf16 %v424_v20, %v423_v19  ;;  %v425_v25 = vld [vmem:[#allocation7 + $0x30] sm:$0xff]  ;;  %s1057_s28 = smov [#allocation8]  }
  0x6f   : > { %795 = vmatpush3.bf16.msra.mxu1 %v794_v15  ;;  %v426_v26 = vld [vmem:[#allocation7 + $0x38] sm:$0xff]  ;;  %v782_v27 = vpack.c.bf16 %v333_v23, %v332_v22  ;;  %v334_v28 = vld [vmem:[#allocation5 + $0x50] sm:$0xff]  ;;  %v427_v31 = vld [vmem:[#allocation7 + $0x40] sm:$0xff]  ;;  %p979_p1 = pnand %p978_p11, %p1383_p0  ;;  %s981_s14 = sshll.u32 %s1057_s28, 4  ;;  %s982_s14 = int_to_ptr.vmem [resolvable:$false] %s981_s14 }
  0x70   : > { %774 = vmatpush3.bf16.msra.mxu0 %v773_v7  ;;  %796 = vmatprep.subr.bf16.mxu1 %v1054_v0  ;;  %v335_v29 = vld [vmem:[#allocation5 + $0x58] sm:$0xff]  ;;  %v803_v30 = vpack.c.bf16 %v426_v26, %v425_v25  ;;  %v428_v32 = vld [vmem:[#allocation7 + $0x48] sm:$0xff]  ;;  %v336_v34 = vld [vmem:[#allocation5 + $0x60] sm:$0xff]  ;;  %s983_s22 = scalar_lea.vmem %s982_s14, 256  ;;  %p984_p7 = scmp.lt.s32.totalorder %s1320_s23, %s982_s14 }
  0x71   : > { %775 = vmatprep.subr.bf16.mxu0 %v1054_v0  ;;  %v785_v33 = vpack.c.bf16 %v335_v29, %v334_v28  ;;  %v337_v35 = vld [vmem:[#allocation5 + $0x68] sm:$0xff]  ;;  %v806_v36 = vpack.c.bf16 %v428_v32, %v427_v31  ;;  %v429_v37 = vld [vmem:[#allocation7 + $0x50] sm:$0xff]  ;;  %v430_v38 = vld [vmem:[#allocation7 + $0x58] sm:$0xff]  ;;  %p980_p3 = pneg %p979_p1  ;;  %p985_p9 = scmp.lt.s32.totalorder %s983_s22, %s977_s11 }
  0x72   : > { %v788_v39 = vpack.c.bf16 %v337_v35, %v336_v34  ;;  %v338_v40 = vld [vmem:[#allocation5 + $0x70] sm:$0xff]  ;;  %v339_v41 = vld [vmem:[#allocation5 + $0x78] sm:$0xff]  ;;  %v809_v42 = vpack.c.bf16 %v430_v38, %v429_v37  ;;  %v431_v45 = vld [vmem:[#allocation7 + $0x60] sm:$0xff] }
  0x73   : > { %798 = vmatpush3.bf16.msra.mxu1 %v797_v18  ;;  %v791_v43 = vpack.c.bf16 %v339_v41, %v338_v40  ;;  %v323_v44 = vld [vmem:[%s1273_s29] sm:$0xff]  ;;  %v432_v46 = vld [vmem:[#allocation7 + $0x68] sm:$0xff]  ;;  %p986_p12 = por %p985_p9, %p984_p7 }
  0x74   : > { %777 = vmatpush3.bf16.msra.mxu0 %v776_v14  ;;  %799 = vmatprep.subr.bf16.mxu1 %v1054_v0  ;;  %v812_v47 = vpack.c.bf16 %v432_v46, %v431_v45  ;;  %v433_v48 = vld [vmem:[#allocation7 + $0x70] sm:$0xff]  ;;  %v434_v49 = vld [vmem:[#allocation7 + $0x78] sm:$0xff] }
  0x75   : > { %778 = vmatprep.subr.bf16.mxu0 %v1054_v0  ;;  %v815_v50 = vpack.c.bf16 %v434_v49, %v433_v48  ;;  %v657_v51 = vld [vmem:[%s1364_s2] ss:$0 sm:$0xff]  ;;  %p987_p2 = pnand %p986_p12, %p980_p3 }
  0x76   : > { %v658_v57 = vld [vmem:[%s1366_s4] ss:$0 sm:$0xff] }
  0x77   : > { %801 = vmatpush3.bf16.msra.mxu1 %v800_v24  ;;  %v659_v6 = vld [vmem:[%s1367_s5] ss:$0 sm:$0xff] }
  0x78   : > { %780 = vmatpush3.bf16.msra.mxu0 %v779_v21  ;;  %802 = vmatprep.subr.bf16.mxu1 %v1054_v0  ;;  %v660_v8 = vld [vmem:[%s1368_s6] ss:$0 sm:$0xff] }
  0x79   : > { %781 = vmatprep.subr.bf16.mxu0 %v1054_v0 }
  0x7b   : > { %804 = vmatpush3.bf16.msra.mxu1 %v803_v30 }
  0x7c   : > { %783 = vmatpush3.bf16.msra.mxu0 %v782_v27  ;;  %805 = vmatprep.subr.bf16.mxu1 %v1054_v0 }
  0x7d   : > { %784 = vmatprep.subr.bf16.mxu0 %v1054_v0 }
  0x7f   : > { %807 = vmatpush3.bf16.msra.mxu1 %v806_v36 }
  0x80   : > { %786 = vmatpush3.bf16.msra.mxu0 %v785_v33  ;;  %808 = vmatprep.subr.bf16.mxu1 %v1054_v0 }
  0x81   : > { %787 = vmatprep.subr.bf16.mxu0 %v1054_v0 }
  0x83   : > { %810 = vmatpush3.bf16.msra.mxu1 %v809_v42 }
  0x84   : > { %789 = vmatpush3.bf16.msra.mxu0 %v788_v39  ;;  %811 = vmatprep.subr.bf16.mxu1 %v1054_v0 }
  0x85   : > { %790 = vmatprep.subr.bf16.mxu0 %v1054_v0 }
  0x87   : > { %813 = vmatpush3.bf16.msra.mxu1 %v812_v47 }
  0x88   : > { %792 = vmatpush3.bf16.msra.mxu0 %v791_v43  ;;  %814 = vmatprep.subr.bf16.mxu1 %v1054_v0 }
  0x8b   : > { %732 = vmatmul.mubr.f32.vlgmr.msra.gmra.mrb[0].mxu0 %v323_v44  ;;  %816 = vmatpush3.bf16.msra.mxu1 %v815_v50 }
 0x15e   : > { %v413_v52 = vpop.f32.mrb[0].mxu0 }
 0x15f   : > { %v414_v53 = vadd.f32 %v657_v51, %v413_v52  ;;  %v733_v54 = vpop.f32.mrb[1].mxu0 }
 0x161   : > { %v417_v55 = vmax.f32 %v414_v53, 0.0 }
 0x163   : > { %v418_v56 = vadd.f32 %v417_v55, %v323_v44 }
 0x165   : > { %767 = vmatmul.mubr.f32.vlgmr.msra.gmra.mrb[0].mxu1 %v418_v56 }
 0x238   : > { %v508_v58 = vpop.f32.mrb[0].mxu1 }
 0x239   : > { %v509_v59 = vadd.f32 %v658_v57, %v508_v58  ;;  %v768_v60 = vpop.f32.mrb[1].mxu1 }
 0x23b   : > { %v512_v61 = vmax.f32 %v509_v59, 0.0 }
 0x23d   : > { %513 = vadd.xlane.f32.xlu0 %v512_v61 }
 0x2ca   : > { %v514_v62 = vpop.xlane.xlu0 %513 }
 0x2cb   : > { %v516_v63 = vmul.f32 0.0078125, %v514_v62 }
 0x2cd   : > { %v517_v0 = vsub.f32 %v512_v61, %v516_v63 }
 0x2cf   : > { %v518_v1 = vmul.f32 %v517_v0, %v517_v0 }
 0x2d1   : > { %519 = vadd.xlane.f32.xlu0 %v518_v1 }
 0x35e   : > { %v520_v2 = vpop.xlane.xlu0 %519 }
 0x35f   : > { %v521_v3 = vmul.f32 0.0078125, %v520_v2 }
 0x361   : > { %v522_v4 = vadd.f32 1e-05, %v521_v3 }
 0x363   : > { %889 = vrsqrt.f32 %v522_v4 }
 0x36d   : > { %v890_v5 = vpop.eup %889 }
 0x36e   : > { %v524_v7 = vmul.f32 %v890_v5, %v517_v0 }
 0x370   : > { %v532_v9 = vmul.f32 %v659_v6, %v524_v7 }
 0x372   : > { %v540_v10 = vadd.f32 %v660_v8, %v532_v9 }
 0x374   : > { %541 = vst [vmem:[%s322_s19] sm:$0xff] %v540_v10 }
 0x375   : > { %990 = shalt.err (!%p987_p2)
}
 0x376   : > { %s991_s12 = scalar_lea.hbm %s1318_s9, 128  ;;  %s995_s21 = scalar_lea.hbm %s1369_s7, 256 }
 0x377   : > { %p992_p13 = scmp.ne.s32.totalorder %s1318_s9, %s991_s12  ;;  %p996_p4 = scmp.lt.u32.totalorder %s1318_s9, %s1369_s7 }
 0x378   : > { %p997_p5 = scmp.lt.u32.totalorder %s995_s21, %s991_s12  ;;  %p999_p11 = scmp.lt.u32.totalorder %s991_s12, %s1318_s9 }
 0x379   : > { %p993_p6 = pnand %p992_p13, %p1383_p0 }
 0x37a   : > { %p998_p8 = por %p997_p5, %p996_p4 }
 0x37b   : > { %p994_p10 = pneg %p993_p6 }
 0x37c   : > { %p1000_p1 = por %p999_p11, %p998_p8 }
 0x37e   : > { %p1001_p3 = pnand %p1000_p1, %p994_p10 }
 0x380   : > { %1004 = shalt.err (!%p1001_p3)
}
 0x381   : > { %827 = dma.vmem_to_hbm [thread:$0]  (%p1383_p0), %s1320_s23, 128, %s1318_s9, %s543_s20  }
 0x382 PF: > { %s568_s29 = sand.u32 1, %s1035_s24   ;;  %p1384_p7 = scmp.ne.s32.totalorder %s1374_s8, 0 }
 0x383   : > { %p1385_p9 = scmp.ge.s32.totalorder %s1047_s27, 2  ;;  %s569_s30 = scalar_lea.sflag [#allocation4], %s568_s29 }
 0x385   : > { %p841_p12 = pnand %p1385_p9, %p1384_p7 }
 0x387   : > { %1030 = dma.done.wait (!%p841_p12), %s569_s30, 128  }
 0x388   : > { %1032 = vsyncadd (!%p841_p12), %s569_s30, 4294967168  ;;  %p21_p2 = scmp.ge.s32.totalorder %s1208_s13, 4   ;;  %s1386_s24 = smov %s1039_s25 }
 0x389   : > { %s1387_s25 = smov %s1043_s26  ;;  %s1388_s26 = smov %s1224_s17 }
 0x38a   : > { %s1389_s27 = smov %s1208_s13  ;;  %23 = sbr.rel (!%p21_p2) target bundleno = 6 (0x6), region = 101 }
 0x391   :  { %574 = vsyncpa [#allocation3], 1 }
 0x392   :  { %576 = vsyncpa [#allocation3 + $0x1], 1 }
 0x393   :  { %577 = vsyncpa [#allocation6], 1 }
 0x394   :  { %578 = vsyncpa [#allocation4], 1 }
 0x395   :  { %580 = vsyncpa [#allocation4 + $0x1], 1 }

</bundles_post_ra>
